<compile_context>
chip_gen: v6e
topology: v6e:2x2x1
jax: 0.10.0
libtpu: 0.0.40
codegen_flags: <defaults>
</compile_context>

<pallas_src>
import functools

import jax
import jax.numpy as jnp
from jax.experimental import pallas as pl
from jax.experimental.pallas import tpu as pltpu

LANE = 128  # vreg lane width; all layer widths are padded to this in the slabs


def _round_up(x, m):
    return (x + m - 1) // m * m


def _mlp_kernel(num_layers, apply_sigmoid, in_size, out_size,
                x_ref, w_ref, b_ref, o_ref):
    """Fused MLP + softmax on one batch tile.

    x_ref : (bb, in_size)   raw (un-padded) input activations
    w_ref : (L, 128, 128)   packed, zero-padded W^T slabs (bfloat16)
    b_ref : (L, 1, 128)     packed, zero-padded biases (float32)
    o_ref : (bb, 128)       lane-dense softmax output (cols >= out_size are 0)
    """
    h = x_ref[...].astype(jnp.bfloat16)            # bf16 MXU operands
    for l in range(num_layers):
        w = w_ref[l]                               # (128, 128) bf16
        if l == 0 and in_size < LANE:
            w = w[:in_size, :]                     # static, sublane-aligned slice
        h = jnp.dot(h, w, preferred_element_type=jnp.float32) + b_ref[l]
        if apply_sigmoid[l]:
            h = jax.nn.sigmoid(h)
        # Padded lanes may hold sigmoid(0)=0.5; harmless because the next
        # layer's padded weight *rows* are zero.
        if l + 1 < num_layers:
            h = h.astype(jnp.bfloat16)

    # Numerically stable softmax over the real logits only.  Exact divide:
    # the approx EUP reciprocal violated sum(prob) == 1 beyond 1e-3.
    lane_idx = jax.lax.broadcasted_iota(jnp.int32, h.shape, dimension=1)
    h = jnp.where(lane_idx < out_size, h, -jnp.inf)
    m = jnp.max(h, axis=1, keepdims=True)
    e = jnp.exp(h - m)                             # padded lanes -> exp(-inf) = 0
    o_ref[...] = (e / jnp.sum(e, axis=1, keepdims=True)).astype(o_ref.dtype)


def pack_params(params):
    """Pack every layer's (W, b) ONCE into zero-padded 128-lane slabs.

    Done at init time, not per forward call.  Weights in bf16, biases in f32.
    """
    num_layers = len(params)
    w_pack = jnp.zeros((num_layers, LANE, LANE), jnp.bfloat16)
    b_pack = jnp.zeros((num_layers, 1, LANE), jnp.float32)
    for l, (w, b) in enumerate(params):
        o, i = w.shape
        assert i <= LANE and o <= LANE, "packed-slab path assumes widths <= 128"
        w_pack = w_pack.at[l, :i, :o].set(w.T.astype(jnp.bfloat16))
        b_pack = b_pack.at[l, 0, :o].set(b.astype(jnp.float32))
    return w_pack, b_pack


@functools.partial(
    jax.jit,
    static_argnames=("hidden_size", "max_batch_block", "min_split_batch"))
def arrythmia_forward(x, w_pack, b_pack, hidden_size, *,
                      max_batch_block=1024, min_split_batch=256):
    """x: (B, in_size) f32; w_pack/b_pack from pack_params; hidden_size: tuple."""
    B, in_size = x.shape
    hidden = tuple(int(h) for h in hidden_size)
    num_layers = len(hidden)
    out_size = hidden[-1]
    # Matches the PyTorch module exactly: a sigmoid follows every Linear whose
    # out_size != 5 (so the 5-wide logits layer feeds softmax directly).
    apply_sigmoid = tuple(h != 5 for h in hidden)
    dims = (in_size,) + hidden
    assert max(dims) <= LANE, "packed-slab path assumes all layer widths <= 128"

    # Balanced batch tiling: one fat tile for small batches; >= 2 "parallel"
    # tiles once B is big enough, so v7x shards the grid across its 2 TCs.
    if B > min_split_batch:
        num_tiles = max(2, pl.cdiv(B, max_batch_block))
    else:
        num_tiles = 1
    bb = _round_up(pl.cdiv(B, num_tiles), 8)
    B_pad = bb * num_tiles

    # Only pad the batch (no lane padding of features), and only when needed.
    x_p = x if B_pad == B else jnp.pad(x, ((0, B_pad - B), (0, 0)))

    kernel = functools.partial(_mlp_kernel, num_layers, apply_sigmoid,
                               in_size, out_size)

    flops = 2 * B_pad * sum(a * b for a, b in zip(dims[:-1], dims[1:]))
    transcendentals = B_pad * (
        sum(d for d, s in zip(dims[1:], apply_sigmoid) if s) + out_size)
    bytes_accessed = int(
        B_pad * in_size * x.dtype.itemsize
        + w_pack.size * w_pack.dtype.itemsize
        + b_pack.size * b_pack.dtype.itemsize
        + B_pad * LANE * 4)

    out_p = pl.pallas_call(
        kernel,
        out_shape=jax.ShapeDtypeStruct((B_pad, LANE), jnp.float32),
        grid=(num_tiles,),
        in_specs=[
            pl.BlockSpec((bb, in_size), lambda i: (i, 0)),
            pl.BlockSpec((num_layers, LANE, LANE), lambda i: (0, 0, 0)),
            pl.BlockSpec((num_layers, 1, LANE), lambda i: (0, 0, 0)),
        ],
        out_specs=pl.BlockSpec((bb, LANE), lambda i: (i, 0)),
        compiler_params=pltpu.CompilerParams(
            dimension_semantics=("parallel",)),
        cost_estimate=pl.CostEstimate(
            flops=flops,
            transcendentals=transcendentals,
            bytes_accessed=bytes_accessed),
    )(x_p, w_pack, b_pack)

    return out_p[:B, :out_size]


def init_params(key, input_size, hidden_size):
    """Deterministic init mimicking PyTorch Linear default U(-1/sqrt(fan_in), ...)."""
    params = []
    in_size = input_size
    for out_size in hidden_size:
        key, kw, kb = jax.random.split(key, 3)
        bound = 1.0 / (in_size ** 0.5)
        w = jax.random.uniform(kw, (out_size, in_size), jnp.float32, -bound, bound)
        b = jax.random.uniform(kb, (out_size,), jnp.float32, -bound, bound)
        params.append((w, b))
        in_size = out_size
    return params


def reference_forward(x, params, hidden_size):
    h = x
    for (w, b), hs in zip(params, hidden_size):
        h = h @ w.T + b
        if int(hs) != 5:
            h = jax.nn.sigmoid(h)
    return jax.nn.softmax(h, axis=1)


def _check(batch, input_size, hidden_size, key):
    key, kparams, kx = jax.random.split(key, 3)
    params = init_params(kparams, input_size, hidden_size)
    w_pack, b_pack = pack_params(params)   # packed once, outside the forward
    x = jax.random.uniform(kx, (batch, input_size), jnp.float32)

    out = jax.block_until_ready(
        arrythmia_forward(x, w_pack, b_pack, tuple(hidden_size)))
    ref = reference_forward(x, params, hidden_size)

    assert out.shape == (batch, hidden_size[-1])
    # bf16 MXU operands (f32 accumulation) vs the pure-f32 reference.
    assert jnp.allclose(out, ref, atol=1e-2, rtol=1e-2), \
        float(jnp.max(jnp.abs(out - ref)))
    # Exact softmax divide -> rows sum to 1 to f32 rounding.
    assert jnp.allclose(jnp.sum(out, axis=1), 1.0, atol=1e-3)
    return key


if __name__ == "__main__":
    key = jax.random.PRNGKey(0)

    input_size = 64
    hidden_size = (32, 16, 5)   # ECG features -> MLP -> 5 arrhythmia classes
    drop_prob = 0.1             # unused by forward (matches the PyTorch module)

    # One fat lane-dense tile (grid of 1).
    key = _check(64, input_size, hidden_size, key)
    # Batch not a multiple of 8 -> exercises the batch-padding / slicing path.
    key = _check(13, input_size, hidden_size, key)
    # B > min_split_batch -> grid of 2 balanced "parallel" tiles (v7x megacore).
    key = _check(300, input_size, hidden_size, key)

    print("KERNEL_OK")
</pallas_src>

<mosaic_0001>
module attributes {stable_mosaic.version = 11 : i64} {
  func.func @_mlp_kernel(%arg0: i32, %arg1: memref<64x64xf32, #tpu.memory_space<vmem>>, %arg2: memref<3x128x128xbf16, #tpu.memory_space<vmem>>, %arg3: memref<3x1x128xf32, #tpu.memory_space<vmem>>, %arg4: memref<64x128xf32, #tpu.memory_space<vmem>>) attributes {dimension_semantics = [#tpu.dimension_semantics<parallel>], iteration_bounds = array<i64: 1>, scalar_prefetch = 0 : i64, scratch_operands = 0 : i64, tpu.core_type = #tpu.core_type<tc>, window_params = [{transform_indices = @transform_0, window_bounds = array<i64: 64, 64>}, {pipeline_mode = #tpu.pipeline_mode<synchronous>, transform_indices = @transform_1, window_bounds = array<i64: 3, 128, 128>}, {pipeline_mode = #tpu.pipeline_mode<synchronous>, transform_indices = @transform_2, window_bounds = array<i64: 3, 1, 128>}, {transform_indices = @transform_3, window_bounds = array<i64: 64, 128>}]} {
    %c0 = arith.constant 0 : index
    %c0_0 = arith.constant 0 : index
    %0 = vector.load %arg1[%c0, %c0_0] : memref<64x64xf32, #tpu.memory_space<vmem>>, vector<64x64xf32>
    %1 = arith.truncf %0 : vector<64x64xf32> to vector<64x64xbf16>
    %c0_1 = arith.constant 0 : index
    %c0_2 = arith.constant 0 : index
    %c0_3 = arith.constant 0 : index
    %2 = vector.load %arg2[%c0_1, %c0_2, %c0_3] : memref<3x128x128xbf16, #tpu.memory_space<vmem>>, vector<1x128x128xbf16>
    %3 = vector.shape_cast %2 : vector<1x128x128xbf16> to vector<128x128xbf16>
    %4 = vector.extract_strided_slice %3 {offsets = [0, 0], sizes = [64, 128], strides = [1, 1]} : vector<128x128xbf16> to vector<64x128xbf16>
    %cst = arith.constant dense<0.000000e+00> : vector<64x128xf32>
    %5 = tpu.matmul %1, %4, %cst {dimension_numbers = #tpu.dot_dimension_numbers<[1], [0], [0], [1], [0, 0, 1, 1], [], []>} : vector<64x64xbf16>, vector<64x128xbf16>, vector<64x128xf32> -> vector<64x128xf32>
    %c0_4 = arith.constant 0 : index
    %c0_5 = arith.constant 0 : index
    %c0_6 = arith.constant 0 : index
    %6 = vector.load %arg3[%c0_4, %c0_5, %c0_6] : memref<3x1x128xf32, #tpu.memory_space<vmem>>, vector<1x1x128xf32>
    %7 = vector.shape_cast %6 : vector<1x1x128xf32> to vector<1x128xf32>
    %8 = vector.broadcast %7 : vector<1x128xf32> to vector<64x128xf32>
    %9 = arith.addf %5, %8 : vector<64x128xf32>
    %10 = arith.negf %9 : vector<64x128xf32>
    %11 = math.exp %10 : vector<64x128xf32>
    %cst_7 = arith.constant 1.000000e+00 : f32
    %12 = vector.broadcast %cst_7 : f32 to vector<64x128xf32>
    %13 = arith.addf %12, %11 : vector<64x128xf32>
    %14 = arith.divf %12, %13 : vector<64x128xf32>
    %15 = arith.truncf %14 : vector<64x128xf32> to vector<64x128xbf16>
    %c1 = arith.constant 1 : index
    %c0_8 = arith.constant 0 : index
    %c0_9 = arith.constant 0 : index
    %16 = vector.load %arg2[%c1, %c0_8, %c0_9] : memref<3x128x128xbf16, #tpu.memory_space<vmem>>, vector<1x128x128xbf16>
    %17 = vector.shape_cast %16 : vector<1x128x128xbf16> to vector<128x128xbf16>
    %cst_10 = arith.constant dense<0.000000e+00> : vector<64x128xf32>
    %18 = tpu.matmul %15, %17, %cst_10 {dimension_numbers = #tpu.dot_dimension_numbers<[1], [0], [0], [1], [0, 0, 1, 1], [], []>} : vector<64x128xbf16>, vector<128x128xbf16>, vector<64x128xf32> -> vector<64x128xf32>
    %c1_11 = arith.constant 1 : index
    %c0_12 = arith.constant 0 : index
    %c0_13 = arith.constant 0 : index
    %19 = vector.load %arg3[%c1_11, %c0_12, %c0_13] : memref<3x1x128xf32, #tpu.memory_space<vmem>>, vector<1x1x128xf32>
    %20 = vector.shape_cast %19 : vector<1x1x128xf32> to vector<1x128xf32>
    %21 = vector.broadcast %20 : vector<1x128xf32> to vector<64x128xf32>
    %22 = arith.addf %18, %21 : vector<64x128xf32>
    %23 = arith.negf %22 : vector<64x128xf32>
    %24 = math.exp %23 : vector<64x128xf32>
    %cst_14 = arith.constant 1.000000e+00 : f32
    %25 = vector.broadcast %cst_14 : f32 to vector<64x128xf32>
    %26 = arith.addf %25, %24 : vector<64x128xf32>
    %27 = arith.divf %25, %26 : vector<64x128xf32>
    %28 = arith.truncf %27 : vector<64x128xf32> to vector<64x128xbf16>
    %c2 = arith.constant 2 : index
    %c0_15 = arith.constant 0 : index
    %c0_16 = arith.constant 0 : index
    %29 = vector.load %arg2[%c2, %c0_15, %c0_16] : memref<3x128x128xbf16, #tpu.memory_space<vmem>>, vector<1x128x128xbf16>
    %30 = vector.shape_cast %29 : vector<1x128x128xbf16> to vector<128x128xbf16>
    %cst_17 = arith.constant dense<0.000000e+00> : vector<64x128xf32>
    %31 = tpu.matmul %28, %30, %cst_17 {dimension_numbers = #tpu.dot_dimension_numbers<[1], [0], [0], [1], [0, 0, 1, 1], [], []>} : vector<64x128xbf16>, vector<128x128xbf16>, vector<64x128xf32> -> vector<64x128xf32>
    %c2_18 = arith.constant 2 : index
    %c0_19 = arith.constant 0 : index
    %c0_20 = arith.constant 0 : index
    %32 = vector.load %arg3[%c2_18, %c0_19, %c0_20] : memref<3x1x128xf32, #tpu.memory_space<vmem>>, vector<1x1x128xf32>
    %33 = vector.shape_cast %32 : vector<1x1x128xf32> to vector<1x128xf32>
    %34 = vector.broadcast %33 : vector<1x128xf32> to vector<64x128xf32>
    %35 = arith.addf %31, %34 : vector<64x128xf32>
    %36 = tpu.iota {dimensions = array<i32: 1>} : vector<64x128xi32>
    %c5_i32 = arith.constant 5 : i32
    %37 = vector.broadcast %c5_i32 : i32 to vector<64x128xi32>
    %38 = arith.cmpi slt, %36, %37 : vector<64x128xi32>
    %cst_21 = arith.constant 0xFF800000 : f32
    %39 = vector.broadcast %cst_21 : f32 to vector<64x128xf32>
    %40 = arith.select %38, %35, %39 : vector<64x128xi1>, vector<64x128xf32>
    %cst_22 = arith.constant dense<0xFF800000> : vector<64xf32>
    %41 = vector.multi_reduction <maximumf>, %40, %cst_22 [1] : vector<64x128xf32> to vector<64xf32>
    %42 = vector.shape_cast %41 : vector<64xf32> to vector<64x1xf32>
    %43 = vector.broadcast %42 : vector<64x1xf32> to vector<64x128xf32>
    %44 = arith.subf %40, %43 : vector<64x128xf32>
    %45 = math.exp %44 : vector<64x128xf32>
    %cst_23 = arith.constant dense<0.000000e+00> : vector<64xf32>
    %46 = vector.multi_reduction <add>, %45, %cst_23 [1] : vector<64x128xf32> to vector<64xf32>
    %47 = vector.shape_cast %46 : vector<64xf32> to vector<64x1xf32>
    %48 = vector.broadcast %47 : vector<64x1xf32> to vector<64x128xf32>
    %49 = arith.divf %45, %48 : vector<64x128xf32>
    %c0_24 = arith.constant 0 : index
    %c0_25 = arith.constant 0 : index
    %50 = vector.load %arg4[%c0_24, %c0_25] : memref<64x128xf32, #tpu.memory_space<vmem>>, vector<64x128xf32>
    tpu.vector_store %arg4[%c0_24, %c0_25], %49 {strides = array<i32>} : memref<64x128xf32, #tpu.memory_space<vmem>>, vector<64x128xf32>,
    return
  }
  func.func @transform_0(%arg0: i32) -> (i32, i32) {
    %c0_i32 = arith.constant 0 : i32
    %c0_i32_0 = arith.constant 0 : i32
    return %arg0, %c0_i32 : i32, i32
  }
  func.func @transform_1(%arg0: i32) -> (i32, i32, i32) {
    %c0_i32 = arith.constant 0 : i32
    %c0_i32_0 = arith.constant 0 : i32
    %c0_i32_1 = arith.constant 0 : i32
    %c0_i32_2 = arith.constant 0 : i32
    return %c0_i32, %c0_i32_0, %c0_i32_1 : i32, i32, i32
  }
  func.func @transform_2(%arg0: i32) -> (i32, i32, i32) {
    %c0_i32 = arith.constant 0 : i32
    %c0_i32_0 = arith.constant 0 : i32
    %c0_i32_1 = arith.constant 0 : i32
    %c0_i32_2 = arith.constant 0 : i32
    return %c0_i32, %c0_i32_0, %c0_i32_1 : i32, i32, i32
  }
  func.func @transform_3(%arg0: i32) -> (i32, i32) {
    %c0_i32 = arith.constant 0 : i32
    %c0_i32_0 = arith.constant 0 : i32
    return %arg0, %c0_i32 : i32, i32
  }
}

</mosaic_0001>

<bundles_post_ra>
// kernel: arrythmia_forward.1
= control target key start
LH: loop header
LB: loop body
LE: loop exit
PB: predicated region body
PF: predicated region fallthrough
CT: control target
= control target key end

     0   :  { %8 = vsyncpa [#allocation3], 0  ;;  %s1033_s0 = inlined_call_operand.hbm [shape: f32[64,64], index: 0, kind: input, shape index: {}]   ;;  %s1034_s1 = inlined_call_operand.hbm [shape: bf16[3,128,128], index: 1, kind: input, shape index: {}]   ;;  %s1035_s2 = inlined_call_operand.vmem [shape: f32[3,1,128], index: 2, kind: input, shape index: {}]   ;;  %s1036_s3 = inlined_call_operand.vmem [shape: f32[64,128], index: 3, kind: output, shape index: {}]  }
   0x1   :  { %9 = vsyncpa [#allocation5], 0  ;;  %s956_s12 = smov [#allocation2]  }
   0x2   :  { %s15_s13 = sshll.u32 %s956_s12, 4  ;;  %s16_s13 = int_to_ptr.vmem [resolvable:$true] %s15_s13 }
   0x3   :  { %s920_s14 = scalar_lea.vmem %s16_s13, 1024  ;;  %p925_p1 = scmp.lt.s32.totalorder %s16_s13, %s16_s13 }
   0x4   :  { %p921_p0 = scmp.ne.s32.totalorder %s16_s13, %s920_s14  ;;  %p926_p2 = scmp.lt.s32.totalorder %s920_s14, %s920_s14 }
   0x6   :  { %p927_p3 = por %p926_p2, %p925_p1 }
   0x8   :  { %p928_p4 = pnand %p927_p3, %p921_p0 }
   0xa   :  { %931 = shalt.err (!%p928_p4)
}
   0xb   :  { %s957_s15 = smov 128   ;;  %s958_s16 = smov 8  }
   0xc   :  { %21 = dma.hbm_to_vmem [thread:$0]  %s1033_s0, 1024, %s16_s13, [#allocation3], %s957_s15, %s957_s15, %s958_s16  }
   0xd   :  { %s959_s19 = smov [#allocation4]  }
   0xe   :  { %s27_s20 = sshll.u32 %s959_s19, 4  ;;  %s28_s20 = int_to_ptr.vmem [resolvable:$true] %s27_s20 }
   0xf   :  { %s940_s21 = scalar_lea.vmem %s28_s20, 3072  ;;  %p945_p6 = scmp.lt.s32.totalorder %s28_s20, %s28_s20 }
  0x10   :  { %p941_p5 = scmp.ne.s32.totalorder %s28_s20, %s940_s21  ;;  %p946_p7 = scmp.lt.s32.totalorder %s940_s21, %s940_s21 }
  0x12   :  { %p947_p8 = por %p946_p7, %p945_p6 }
  0x14   :  { %p948_p9 = pnand %p947_p8, %p941_p5 }
  0x16   :  { %951 = shalt.err (!%p948_p9)
}
  0x17   :  { %s960_s22 = smov 64   ;;  %s961_s23 = smov 4  }
  0x18   :  { %33 = dma.hbm_to_vmem [thread:$0]  %s1034_s1, 3072, %s28_s20, [#allocation5], %s960_s22, %s960_s22, %s961_s23  }
  0x19   :  { %952 = dma.done.wait [#allocation3], 1024  }
  0x1a   :  { %953 = vsyncadd [#allocation3], 4294966272 }
  0x1b   :  { %954 = dma.done.wait [#allocation5], 3072  }
  0x1c   :  { %955 = vsyncadd [#allocation5], 4294964224  ;;  %v796_v0 = vld [vmem:[#allocation4 + $0x18] sm:$0xff]   ;;  %v797_v1 = vld [vmem:[#allocation4 + $0x10] sm:$0xff]   ;;  %vm94_vm0 = vcmask 523264  }
  0x1d   :  { %726 = vmatprep.subr.bf16.mxu0 %v796_v0  ;;  %v798_v2 = vld [vmem:[#allocation4 + $0x8] sm:$0xff]   ;;  %v43_v3 = vld [vmem:[#allocation2] sm:$0xff]  ;;  %v45_v7 = vld [vmem:[#allocation2 + $0x10] sm:$0xff] }
  0x1e   :  { %727 = vmatpush3.bf16.msra.mxu0 %v796_v0  ;;  %v44_v4 = vld [vmem:[#allocation2 + $0x8] sm:$0xff]  ;;  %v799_v6 = vld [vmem:[#allocation4] sm:$0xff]   ;;  %v46_v8 = vld [vmem:[#allocation2 + $0x18] sm:$0xff] }
  0x1f   :  { %728 = vmatprep.subr.bf16.mxu0 %v797_v1  ;;  %v51_v5 = vpack.c.bf16 %v44_v4, %v43_v3  ;;  %v47_v9 = vld [vmem:[#allocation2 + $0x20] sm:$0xff]  ;;  %v48_v10 = vld [vmem:[#allocation2 + $0x28] sm:$0xff]  ;;  %v52_v11 = vpack.c.bf16 %v46_v8, %v45_v7  ;;  %v49_v13 = vld [vmem:[#allocation2 + $0x30] sm:$0xff] }
  0x20   :  { %v53_v12 = vpack.c.bf16 %v48_v10, %v47_v9  ;;  %v50_v14 = vld [vmem:[#allocation2 + $0x38] sm:$0xff]  ;;  %v801_v17 = vld [vmem:[#allocation4 + $0x70] sm:$0xff]   ;;  %v802_v18 = vld [vmem:[#allocation4 + $0x68] sm:$0xff]  }
  0x21   :  { %734 = vmatprep.mubr.msk.bf16.mxu0 %vm94_vm0, %v51_v5  ;;  %v54_v15 = vpack.c.bf16 %v50_v14, %v49_v13  ;;  %v800_v16 = vld [vmem:[#allocation4 + $0x78] sm:$0xff]   ;;  %v803_v19 = vld [vmem:[#allocation4 + $0x60] sm:$0xff]   ;;  %v805_v21 = vld [vmem:[#allocation4 + $0x50] sm:$0xff]  }
  0x22   :  { %729 = vmatpush3.bf16.msra.mxu0 %v797_v1  ;;  %742 = vmatprep.subr.bf16.mxu1 %v800_v16  ;;  %v804_v20 = vld [vmem:[#allocation4 + $0x58] sm:$0xff]   ;;  %v806_v22 = vld [vmem:[#allocation4 + $0x48] sm:$0xff]   ;;  %v807_v23 = vld [vmem:[#allocation4 + $0x40] sm:$0xff]  }
  0x23   :  { %730 = vmatprep.subr.bf16.mxu0 %v798_v2  ;;  %743 = vmatpush3.bf16.msra.mxu1 %v800_v16  ;;  %v649_v24 = vld [vmem:[%s1035_s2] ss:$0 sm:$0xff]  ;;  %v808_v13 = vld [vmem:[#allocation4 + $0xb8] sm:$0xff]   ;;  %v809_v14 = vld [vmem:[#allocation4 + $0xb0] sm:$0xff]  }
  0x24   :  { %744 = vmatprep.subr.bf16.mxu1 %v801_v17  ;;  %v811_v16 = vld [vmem:[#allocation4 + $0xa0] sm:$0xff]  }
  0x26   :  { %731 = vmatpush3.bf16.msra.mxu0 %v798_v2 }
  0x27   :  { %732 = vmatprep.subr.bf16.mxu0 %v799_v6  ;;  %745 = vmatpush3.bf16.msra.mxu1 %v801_v17  ;;  %v812_v17 = vld [vmem:[#allocation4 + $0x98] sm:$0xff]  }
  0x28   :  { %746 = vmatprep.subr.bf16.mxu1 %v802_v18 }
  0x2a   :  { %733 = vmatpush3.bf16.msra.mxu0 %v799_v6 }
  0x2b   :  { %747 = vmatpush3.bf16.msra.mxu1 %v802_v18  ;;  %766 = vmatprep.subr.bf16.mxu0 %v808_v13  ;;  %v813_v18 = vld [vmem:[#allocation4 + $0x90] sm:$0xff]  }
  0x2c   :  { %748 = vmatprep.subr.bf16.mxu1 %v803_v19 }
  0x2d   :  { %735 = vmatmul.mubr.msk.bf16.vlgmr.msra.gmra.mxu0 %vm94_vm0, %v52_v11 }
  0x2e   :  { %738 = vmatprep.mubr.msk.bf16.mxu0 %vm94_vm0, %v53_v12  ;;  %767 = vmatpush3.bf16.msra.mxu0 %v808_v13 }
  0x2f   :  { %749 = vmatpush3.bf16.msra.mxu1 %v803_v19  ;;  %768 = vmatprep.subr.bf16.mxu0 %v809_v14  ;;  %v814_v19 = vld [vmem:[#allocation4 + $0x88] sm:$0xff]  }
  0x30   :  { %750 = vmatprep.subr.bf16.mxu1 %v804_v20 }
  0x32   :  { %769 = vmatpush3.bf16.msra.mxu0 %v809_v14 }
  0x33   :  { %751 = vmatpush3.bf16.msra.mxu1 %v804_v20  ;;  %v815_v20 = vld [vmem:[#allocation4 + $0x80] sm:$0xff]  }
  0x34   :  { %752 = vmatprep.subr.bf16.mxu1 %v805_v21 }
  0x35   :  { %739 = vmatmul.mubr.msk.bf16.gmra.mxu0 %vm94_vm0, %v54_v15  ;;  %v810_v15 = vld [vmem:[#allocation4 + $0xa8] sm:$0xff]  }
  0x36   :  { %770 = vmatprep.subr.bf16.mxu0 %v810_v15 }
  0x37   :  { %753 = vmatpush3.bf16.msra.mxu1 %v805_v21  ;;  %771 = vmatpush3.bf16.msra.mxu0 %v810_v15  ;;  %v667_v21 = vld [vmem:[%s1035_s2 + $0x1] ss:$0 sm:$0xff] }
  0x38   :  { %754 = vmatprep.subr.bf16.mxu1 %v806_v22  ;;  %772 = vmatprep.subr.bf16.mxu0 %v811_v16 }
  0x3b   :  { %755 = vmatpush3.bf16.msra.mxu1 %v806_v22  ;;  %773 = vmatpush3.bf16.msra.mxu0 %v811_v16 }
  0x3c   :  { %756 = vmatprep.subr.bf16.mxu1 %v807_v23  ;;  %774 = vmatprep.subr.bf16.mxu0 %v812_v17 }
  0x3f   :  { %757 = vmatpush3.bf16.msra.mxu1 %v807_v23  ;;  %775 = vmatpush3.bf16.msra.mxu0 %v812_v17 }
  0x40   :  { %776 = vmatprep.subr.bf16.mxu0 %v813_v18 }
  0x43   :  { %777 = vmatpush3.bf16.msra.mxu0 %v813_v18 }
  0x44   :  { %778 = vmatprep.subr.bf16.mxu0 %v814_v19 }
  0x47   :  { %779 = vmatpush3.bf16.msra.mxu0 %v814_v19 }
  0x48   :  { %780 = vmatprep.subr.bf16.mxu0 %v815_v20 }
  0x4b   :  { %781 = vmatpush3.bf16.msra.mxu0 %v815_v20 }
  0xed   :  { %v736_v25 = vpop.f32.mrf.mxu0 }
  0xee   :  { %v150_v26 = vadd.f32 %v736_v25, %v649_v24 }
  0xef   :  { %v141_v27 = vpop.f32.mrf.mxu0 }
  0xf0   :  { %v142_v28 = vadd.f32 %v649_v24, %v141_v27  ;;  %v660_v29 = vmul.f32 -1.442695, %v150_v26 }
  0xf1   :  { %v737_v30 = vpop.f32.mrf.mxu0 }
  0xf2   :  { %v658_v31 = vmul.f32 -1.442695, %v142_v28  ;;  %v153_v32 = vadd.f32 %v737_v30, %v649_v24 }
  0xf3   :  { %v144_v33 = vpop.f32.mrf.mxu0 }
  0xf4   :  { %816 = vpow2.f32 %v658_v31  ;;  %v661_v34 = vmul.f32 -1.442695, %v153_v32  ;;  %v145_v35 = vadd.f32 %v649_v24, %v144_v33 }
  0xf5   :  { %818 = vpow2.f32 %v660_v29  ;;  %v740_v36 = vpop.f32.mrf.mxu0 }
  0xf6   :  { %820 = vpow2.f32 %v661_v34  ;;  %v659_v37 = vmul.f32 -1.442695, %v145_v35  ;;  %v166_v38 = vadd.f32 %v740_v36, %v649_v24 }
  0xf7   :  { %v157_v39 = vpop.f32.mrf.mxu0 }
  0xf8   :  { %822 = vpow2.f32 %v659_v37  ;;  %v158_v40 = vadd.f32 %v649_v24, %v157_v39  ;;  %v664_v41 = vmul.f32 -1.442695, %v166_v38 }
  0xf9   :  { %v741_v42 = vpop.f32.mrf.mxu0 }
  0xfa   :  { %v662_v43 = vmul.f32 -1.442695, %v158_v40  ;;  %v169_v44 = vadd.f32 %v741_v42, %v649_v24 }
  0xfb   :  { %v160_v45 = vpop.f32.mrf.mxu0 }
  0xfc   :  { %824 = vpow2.f32 %v662_v43  ;;  %v665_v46 = vmul.f32 -1.442695, %v169_v44  ;;  %v161_v47 = vadd.f32 %v649_v24, %v160_v45 }
  0xfd   :  { %826 = vpow2.f32 %v664_v41 }
  0xfe   :  { %828 = vpow2.f32 %v665_v46  ;;  %v663_v48 = vmul.f32 -1.442695, %v161_v47 }
 0x100   :  { %830 = vpow2.f32 %v663_v48 }
 0x101   :  { %v817_v49 = vpop.eup %816 }
 0x102   :  { %v819_v50 = vpop.eup %818  ;;  %v196_v51 = vadd.f32 1.0, %v817_v49 }
 0x103   :  { %v821_v52 = vpop.eup %820  ;;  %v198_v55 = vadd.f32 1.0, %v819_v50 }
 0x104   :  { %v199_v53 = vadd.f32 1.0, %v821_v52  ;;  %832 = vrcp.f32 %v196_v51 }
 0x105   :  { %v823_v54 = vpop.eup %822 }
 0x106   :  { %v197_v56 = vadd.f32 1.0, %v823_v54  ;;  %834 = vrcp.f32 %v199_v53 }
 0x108   :  { %836 = vrcp.f32 %v197_v56 }
 0x109   :  { %v825_v57 = vpop.eup %824  ;;  %838 = vrcp.f32 %v198_v55 }
 0x10a   :  { %v827_v58 = vpop.eup %826  ;;  %v200_v59 = vadd.f32 1.0, %v825_v57 }
 0x10b   :  { %v829_v60 = vpop.eup %828  ;;  %v202_v63 = vadd.f32 1.0, %v827_v58 }
 0x10c   :  { %v203_v61 = vadd.f32 1.0, %v829_v60  ;;  %840 = vrcp.f32 %v200_v59 }
 0x10d   :  { %v831_v62 = vpop.eup %830 }
 0x10e   :  { %v201_v0 = vadd.f32 1.0, %v831_v62  ;;  %842 = vrcp.f32 %v203_v61 }
 0x110   :  { %844 = vrcp.f32 %v201_v0 }
 0x111   :  { %846 = vrcp.f32 %v202_v63  ;;  %v833_v1 = vpop.eup %832 }
 0x113   :  { %v835_v2 = vpop.eup %834 }
 0x115   :  { %v837_v3 = vpop.eup %836 }
 0x116   :  { %v839_v4 = vpop.eup %838  ;;  %v220_v5 = vpack.c.bf16 %v837_v3, %v833_v1 }
 0x117   :  { %v221_v6 = vpack.c.bf16 %v835_v2, %v839_v4 }
 0x118   :  { %758 = vmatprep.mubr.bf16.mxu1 %v220_v5 }
 0x119   :  { %759 = vmatmul.mubr.bf16.vlgmr.msra.gmra.mxu1 %v221_v6  ;;  %v841_v7 = vpop.eup %840 }
 0x11b   :  { %v843_v8 = vpop.eup %842 }
 0x11d   :  { %v845_v9 = vpop.eup %844 }
 0x11e   :  { %v847_v10 = vpop.eup %846  ;;  %v222_v11 = vpack.c.bf16 %v845_v9, %v841_v7 }
 0x11f   :  { %v223_v12 = vpack.c.bf16 %v843_v8, %v847_v10  ;;  %v552_v10 = vlaneseq }
 0x120   :  { %762 = vmatprep.mubr.bf16.mxu1 %v222_v11 }
 0x121   :  { %763 = vmatmul.mubr.bf16.gmra.mxu1 %v223_v12  ;;  %v553_v11 = vand.u32 127, %v552_v10  ;;  %v685_v12 = vld [vmem:[%s1035_s2 + $0x2] ss:$0 sm:$0xff] }
 0x123   :  { %vm554_vm1 = vcmp.lt.s32.totalorder %v553_v11, 5 }
 0x1d9   :  { %v760_v22 = vpop.f32.mrf.mxu1 }
 0x1da   :  { %v340_v23 = vadd.f32 %v760_v22, %v667_v21 }
 0x1db   :  { %v331_v24 = vpop.f32.mrf.mxu1 }
 0x1dc   :  { %v332_v25 = vadd.f32 %v667_v21, %v331_v24  ;;  %v678_v26 = vmul.f32 -1.442695, %v340_v23 }
 0x1dd   :  { %v761_v27 = vpop.f32.mrf.mxu1 }
 0x1de   :  { %v676_v28 = vmul.f32 -1.442695, %v332_v25  ;;  %v343_v29 = vadd.f32 %v761_v27, %v667_v21 }
 0x1df   :  { %v334_v30 = vpop.f32.mrf.mxu1 }
 0x1e0   :  { %848 = vpow2.f32 %v676_v28  ;;  %v679_v31 = vmul.f32 -1.442695, %v343_v29  ;;  %v335_v32 = vadd.f32 %v667_v21, %v334_v30 }
 0x1e1   :  { %850 = vpow2.f32 %v678_v26  ;;  %v764_v33 = vpop.f32.mrf.mxu1 }
 0x1e2   :  { %852 = vpow2.f32 %v679_v31  ;;  %v677_v34 = vmul.f32 -1.442695, %v335_v32  ;;  %v356_v35 = vadd.f32 %v764_v33, %v667_v21 }
 0x1e3   :  { %v347_v36 = vpop.f32.mrf.mxu1 }
 0x1e4   :  { %854 = vpow2.f32 %v677_v34  ;;  %v348_v37 = vadd.f32 %v667_v21, %v347_v36  ;;  %v682_v38 = vmul.f32 -1.442695, %v356_v35 }
 0x1e5   :  { %v765_v39 = vpop.f32.mrf.mxu1 }
 0x1e6   :  { %v680_v40 = vmul.f32 -1.442695, %v348_v37  ;;  %v359_v41 = vadd.f32 %v765_v39, %v667_v21 }
 0x1e7   :  { %v350_v42 = vpop.f32.mrf.mxu1 }
 0x1e8   :  { %856 = vpow2.f32 %v680_v40  ;;  %v683_v43 = vmul.f32 -1.442695, %v359_v41  ;;  %v351_v44 = vadd.f32 %v667_v21, %v350_v42 }
 0x1e9   :  { %858 = vpow2.f32 %v682_v38 }
 0x1ea   :  { %860 = vpow2.f32 %v683_v43  ;;  %v681_v45 = vmul.f32 -1.442695, %v351_v44 }
 0x1ec   :  { %862 = vpow2.f32 %v681_v45 }
 0x1ed   :  { %v849_v46 = vpop.eup %848 }
 0x1ee   :  { %v851_v47 = vpop.eup %850  ;;  %v386_v48 = vadd.f32 1.0, %v849_v46 }
 0x1ef   :  { %v853_v49 = vpop.eup %852  ;;  %v388_v52 = vadd.f32 1.0, %v851_v47 }
 0x1f0   :  { %v389_v50 = vadd.f32 1.0, %v853_v49  ;;  %864 = vrcp.f32 %v386_v48 }
 0x1f1   :  { %v855_v51 = vpop.eup %854 }
 0x1f2   :  { %v387_v53 = vadd.f32 1.0, %v855_v51  ;;  %866 = vrcp.f32 %v389_v50 }
 0x1f4   :  { %868 = vrcp.f32 %v387_v53 }
 0x1f5   :  { %v857_v54 = vpop.eup %856  ;;  %870 = vrcp.f32 %v388_v52 }
 0x1f6   :  { %v859_v55 = vpop.eup %858  ;;  %v390_v56 = vadd.f32 1.0, %v857_v54 }
 0x1f7   :  { %v861_v57 = vpop.eup %860  ;;  %v392_v60 = vadd.f32 1.0, %v859_v55 }
 0x1f8   :  { %v393_v58 = vadd.f32 1.0, %v861_v57  ;;  %872 = vrcp.f32 %v390_v56 }
 0x1f9   :  { %v863_v59 = vpop.eup %862 }
 0x1fa   :  { %v391_v61 = vadd.f32 1.0, %v863_v59  ;;  %874 = vrcp.f32 %v393_v58 }
 0x1fc   :  { %876 = vrcp.f32 %v391_v61 }
 0x1fd   :  { %878 = vrcp.f32 %v392_v60  ;;  %v865_v62 = vpop.eup %864 }
 0x1ff   :  { %v867_v63 = vpop.eup %866 }
 0x201   :  { %v869_v0 = vpop.eup %868 }
 0x202   :  { %v871_v1 = vpop.eup %870  ;;  %v410_v2 = vpack.c.bf16 %v869_v0, %v865_v62 }
 0x203   :  { %v411_v3 = vpack.c.bf16 %v867_v63, %v871_v1 }
 0x204   :  { %782 = vmatprep.mubr.bf16.mxu0 %v410_v2 }
 0x205   :  { %783 = vmatmul.mubr.bf16.vlgmr.msra.gmra.mxu0 %v411_v3  ;;  %v873_v4 = vpop.eup %872 }
 0x207   :  { %v875_v5 = vpop.eup %874 }
 0x209   :  { %v877_v6 = vpop.eup %876 }
 0x20a   :  { %v879_v7 = vpop.eup %878  ;;  %v412_v8 = vpack.c.bf16 %v877_v6, %v873_v4 }
 0x20b   :  { %v413_v9 = vpack.c.bf16 %v875_v5, %v879_v7 }
 0x20c   :  { %786 = vmatprep.mubr.bf16.mxu0 %v412_v8 }
 0x20d   :  { %787 = vmatmul.mubr.bf16.gmra.mxu0 %v413_v9 }
 0x2c5   :  { %v784_v13 = vpop.f32.mrf.mxu0 }
 0x2c6   :  { %v530_v14 = vadd.f32 %v784_v13, %v685_v12 }
 0x2c7   :  { %v521_v15 = vpop.f32.mrf.mxu0 }
 0x2c8   :  { %v522_v16 = vadd.f32 %v685_v12, %v521_v15  ;;  %v557_v17 = vsel %vm554_vm1, %v530_v14, -inf }
 0x2c9   :  { %567 = vmax.xlane.f32.xlu1 %v557_v17  ;;  %v785_v18 = vpop.f32.mrf.mxu0 }
 0x2ca   :  { %v533_v19 = vadd.f32 %v785_v18, %v685_v12  ;;  %v555_v20 = vsel %vm554_vm1, %v522_v16, -inf }
 0x2cb   :  { %v524_v21 = vpop.f32.mrf.mxu0  ;;  %563 = vmax.xlane.f32.xlu0 %v555_v20 }
 0x2cc   :  { %v525_v22 = vadd.f32 %v685_v12, %v524_v21  ;;  %v558_v23 = vsel %vm554_vm1, %v533_v19, -inf }
 0x2cd   :  { %569 = vmax.xlane.f32.xlu1 %v558_v23  ;;  %v788_v24 = vpop.f32.mrf.mxu0 }
 0x2ce   :  { %v556_v25 = vsel %vm554_vm1, %v525_v22, -inf  ;;  %v546_v29 = vadd.f32 %v788_v24, %v685_v12 }
 0x2cf   :  { %v537_v26 = vpop.f32.mrf.mxu0  ;;  %565 = vmax.xlane.f32.xlu0 %v556_v25 }
 0x2d0   :  { %v538_v27 = vadd.f32 %v685_v12, %v537_v26  ;;  %v561_v35 = vsel %vm554_vm1, %v546_v29, -inf }
 0x2d1   :  { %v789_v28 = vpop.f32.mrf.mxu0 }
 0x2d2   :  { %v559_v30 = vsel %vm554_vm1, %v538_v27, -inf  ;;  %v549_v33 = vadd.f32 %v789_v28, %v685_v12 }
 0x2d3   :  { %v540_v31 = vpop.f32.mrf.mxu0  ;;  %571 = vmax.xlane.f32.xlu0 %v559_v30 }
 0x2d4   :  { %v541_v32 = vadd.f32 %v685_v12, %v540_v31  ;;  %v562_v36 = vsel %vm554_vm1, %v549_v33, -inf }
 0x2d6   :  { %v560_v34 = vsel %vm554_vm1, %v541_v32, -inf }
 0x2d7   :  { %573 = vmax.xlane.f32.xlu1 %v560_v34  ;;  %575 = vmax.xlane.f32.xlu0 %v561_v35 }
 0x2db   :  { %577 = vmax.xlane.f32.xlu1 %v562_v36 }
 0x352   :  { %v568_v37 = vpop.xlane.xlu1 %567 }
 0x353   :  { %v581_v38 = vsub.f32 %v557_v17, %v568_v37 }
 0x354   :  { %v564_v39 = vpop.xlane.xlu0 %563 }
 0x355   :  { %v591_v40 = vmul.f32 1.442695, %v581_v38  ;;  %v579_v41 = vsub.f32 %v555_v20, %v564_v39 }
 0x356   :  { %v570_v42 = vpop.xlane.xlu1 %569 }
 0x357   :  { %880 = vpow2.f32 %v591_v40  ;;  %v587_v43 = vmul.f32 1.442695, %v579_v41  ;;  %v582_v44 = vsub.f32 %v558_v23, %v570_v42 }
 0x358   :  { %v566_v45 = vpop.xlane.xlu0 %565 }
 0x359   :  { %v593_v46 = vmul.f32 1.442695, %v582_v44  ;;  %v580_v47 = vsub.f32 %v556_v25, %v566_v45  ;;  %882 = vpow2.f32 %v587_v43 }
 0x35b   :  { %884 = vpow2.f32 %v593_v46  ;;  %v589_v48 = vmul.f32 1.442695, %v580_v47 }
 0x35c   :  { %v572_v49 = vpop.xlane.xlu0 %571 }
 0x35d   :  { %v583_v50 = vsub.f32 %v559_v30, %v572_v49  ;;  %886 = vpow2.f32 %v589_v48 }
 0x35f   :  { %v595_v51 = vmul.f32 1.442695, %v583_v50 }
 0x360   :  { %v574_v52 = vpop.xlane.xlu1 %573  ;;  %v576_v53 = vpop.xlane.xlu0 %575 }
 0x361   :  { %888 = vpow2.f32 %v595_v51  ;;  %v584_v54 = vsub.f32 %v560_v34, %v574_v52  ;;  %v585_v55 = vsub.f32 %v561_v35, %v576_v53 }
 0x363   :  { %v597_v56 = vmul.f32 1.442695, %v584_v54  ;;  %v599_v57 = vmul.f32 1.442695, %v585_v55 }
 0x364   :  { %v881_v58 = vpop.eup %880  ;;  %v578_v59 = vpop.xlane.xlu1 %577 }
 0x365   :  { %890 = vpow2.f32 %v597_v56  ;;  %v586_v60 = vsub.f32 %v562_v36, %v578_v59  ;;  %607 = vadd.xlane.f32.xlu0 %v881_v58 }
 0x366   :  { %892 = vpow2.f32 %v599_v57  ;;  %v883_v61 = vpop.eup %882 }
 0x367   :  { %v601_v62 = vmul.f32 1.442695, %v586_v60 }
 0x368   :  { %v885_v63 = vpop.eup %884 }
 0x369   :  { %894 = vpow2.f32 %v601_v62  ;;  %609 = vadd.xlane.f32.xlu1 %v885_v63  ;;  %603 = vadd.xlane.f32.xlu0 %v883_v61 }
 0x36a   :  { %v887_v0 = vpop.eup %886 }
 0x36d   :  { %605 = vadd.xlane.f32.xlu1 %v887_v0 }
 0x36e   :  { %v889_v1 = vpop.eup %888 }
 0x36f   :  { %611 = vadd.xlane.f32.xlu0 %v889_v1 }
 0x372   :  { %v891_v2 = vpop.eup %890 }
 0x373   :  { %v893_v3 = vpop.eup %892  ;;  %613 = vadd.xlane.f32.xlu1 %v891_v2 }
 0x374   :  { %615 = vadd.xlane.f32.xlu0 %v893_v3 }
 0x376   :  { %v895_v4 = vpop.eup %894 }
 0x377   :  { %617 = vadd.xlane.f32.xlu1 %v895_v4 }
 0x3ee   :  { %v608_v5 = vpop.xlane.xlu0 %607 }
 0x3ef   :  { %896 = vrcp.f32 %v608_v5 }
 0x3f2   :  { %v610_v6 = vpop.xlane.xlu1 %609  ;;  %v604_v7 = vpop.xlane.xlu0 %603 }
 0x3f3   :  { %898 = vrcp.f32 %v610_v6 }
 0x3f4   :  { %900 = vrcp.f32 %v604_v7 }
 0x3f6   :  { %v606_v8 = vpop.xlane.xlu1 %605 }
 0x3f7   :  { %902 = vrcp.f32 %v606_v8 }
 0x3f8   :  { %v612_v9 = vpop.xlane.xlu0 %611 }
 0x3f9   :  { %904 = vrcp.f32 %v612_v9 }
 0x3fc   :  { %v897_v10 = vpop.eup %896  ;;  %v614_v11 = vpop.xlane.xlu1 %613 }
 0x3fd   :  { %v624_v12 = vmul.f32 %v897_v10, %v881_v58  ;;  %906 = vrcp.f32 %v614_v11  ;;  %v616_v13 = vpop.xlane.xlu0 %615 }
 0x3fe   :  { %908 = vrcp.f32 %v616_v13 }
 0x3ff   :  { %637 = vst [vmem:[%s1036_s3 + $0x10] sm:$0xff] %v624_v12 }
 0x400   :  { %v899_v14 = vpop.eup %898  ;;  %v618_v15 = vpop.xlane.xlu1 %617 }
 0x401   :  { %v901_v16 = vpop.eup %900  ;;  %v626_v17 = vmul.f32 %v899_v14, %v885_v63  ;;  %910 = vrcp.f32 %v618_v15 }
 0x402   :  { %v620_v18 = vmul.f32 %v901_v16, %v883_v61 }
 0x403   :  { %638 = vst [vmem:[%s1036_s3 + $0x18] sm:$0xff] %v626_v17 }
 0x404   :  { %v903_v19 = vpop.eup %902  ;;  %635 = vst [vmem:[%s1036_s3] sm:$0xff] %v620_v18 }
 0x405   :  { %v622_v20 = vmul.f32 %v903_v19, %v887_v0 }
 0x406   :  { %v905_v21 = vpop.eup %904 }
 0x407   :  { %636 = vst [vmem:[%s1036_s3 + $0x8] sm:$0xff] %v622_v20  ;;  %v628_v22 = vmul.f32 %v905_v21, %v889_v1 }
 0x409   :  { %639 = vst [vmem:[%s1036_s3 + $0x20] sm:$0xff] %v628_v22 }
 0x40a   :  { %v907_v23 = vpop.eup %906 }
 0x40b   :  { %v909_v24 = vpop.eup %908  ;;  %v630_v25 = vmul.f32 %v907_v23, %v891_v2 }
 0x40c   :  { %v632_v26 = vmul.f32 %v909_v24, %v893_v3 }
 0x40d   :  { %640 = vst [vmem:[%s1036_s3 + $0x28] sm:$0xff] %v630_v25 }
 0x40e   :  { %v911_v27 = vpop.eup %910  ;;  %641 = vst [vmem:[%s1036_s3 + $0x30] sm:$0xff] %v632_v26 }
 0x40f   :  { %v634_v28 = vmul.f32 %v911_v27, %v895_v4 }
 0x411   :  { %642 = vst [vmem:[%s1036_s3 + $0x38] sm:$0xff] %v634_v28 }
 0x412   :  { %647 = vsyncpa [#allocation3], 1 }
 0x413   :  { %648 = vsyncpa [#allocation5], 1 }

</bundles_post_ra>
